<compile_context>
chip_gen: v7x
topology: tpu7x:2x2x1
jax: 0.10.0
libtpu: 0.0.40
codegen_flags: <defaults>
</compile_context>

<pallas_src>
import functools
import math

import jax
import jax.numpy as jnp
from jax.experimental import pallas as pl
from jax.experimental.pallas import tpu as pltpu


def _round_up(x: int, m: int) -> int:
    return ((x + m - 1) // m) * m


def make_inv_dyn_kernel(num_hidden_layers: int, seq_len: int,
                        rows_per_tile: int, total_rows: int):
    """Kernel computing the MLP forward + masked squared-error partial sum.

    Kernel ref layout:
      refs[0]  : x_ref   [rows_per_tile, F]  f32  (flattened state features)
      refs[1]  : tgt_ref [rows_per_tile, A]  f32  (flattened target actions)
      refs[2:] : w0_top [F,L] bf16, w0_bot [F,L] bf16, b0 [1,L] f32,
                 (num_hidden_layers-1) x (w [L,L] bf16, b [1,L] f32),
                 w_out [L,A] bf16, b_out [1,A] f32
      refs[-1] : out_ref [1, num_tiles] f32 (SMEM, per-tile partial sums)
    """
    m = rows_per_tile - 1                       # row pairs processed per tile
    pow2 = (seq_len & (seq_len - 1)) == 0

    def kernel(*refs):
        x_ref, tgt_ref = refs[0], refs[1]
        out_ref = refs[-1]
        w_refs = refs[2:-1]

        step = pl.program_id(0)

        # In-kernel temporal pairing + bf16 cast (no wrapper HBM passes).
        s = x_ref[pl.ds(0, m), :].astype(jnp.bfloat16)
        ns = x_ref[pl.ds(1, m), :].astype(jnp.bfloat16)

        # First hidden layer: split-K matmul replaces the concat.
        w0t_ref, w0b_ref, b0_ref = w_refs[0], w_refs[1], w_refs[2]
        h = (
            jnp.dot(s, w0t_ref[...], preferred_element_type=jnp.float32)
            + jnp.dot(ns, w0b_ref[...], preferred_element_type=jnp.float32)
            + b0_ref[...]
        )
        h = jnp.maximum(h, 0.0)

        # Remaining hidden layers.
        idx = 3
        for _ in range(num_hidden_layers - 1):
            w_ref, b_ref = w_refs[idx], w_refs[idx + 1]
            idx += 2
            h = jnp.maximum(
                jnp.dot(h.astype(jnp.bfloat16), w_ref[...],
                        preferred_element_type=jnp.float32) + b_ref[...],
                0.0,
            )

        # Output layer (kept in vregs; never stored).
        w_out_ref, b_out_ref = w_refs[idx], w_refs[idx + 1]
        pred = (
            jnp.dot(h.astype(jnp.bfloat16), w_out_ref[...],
                    preferred_element_type=jnp.float32)
            + b_out_ref[...]
        )

        diff = pred - tgt_ref[pl.ds(1, m), :]

        # Row j of this tile pairs flat row r = step*rows_per_tile + j with
        # r + 1.  rows_per_tile is a multiple of T, so r mod T == j mod T.
        # Valid pair iff t != T-1 (no cross-batch pair) and r+1 is real data
        # (a partial last tile may read past the end of the arrays).
        row = jax.lax.broadcasted_iota(jnp.int32, diff.shape, 0)
        if pow2:
            t_idx = jnp.bitwise_and(row, seq_len - 1)
        else:
            t_idx = jax.lax.rem(row, seq_len)
        limit = jnp.int32(total_rows - 1) - step * rows_per_tile
        valid = (t_idx != seq_len - 1) & (row < limit)
        sq = jnp.where(valid, diff * diff, 0.0)

        out_ref[0, step] = jnp.sum(sq)

    return kernel


def init_params(key, feature_dim, action_dim, num_layers, layer_size):
    """Deterministic synthetic parameter init matching the nn.Module shapes."""
    params = {"hidden": [], "out": None}
    in_dim = 2 * feature_dim
    for _ in range(num_layers):
        key, kw, kb = jax.random.split(key, 3)
        w = 0.1 * jax.random.normal(kw, (in_dim, layer_size), jnp.float32)
        b = 0.1 * jax.random.normal(kb, (1, layer_size), jnp.float32)
        params["hidden"].append((w, b))
        in_dim = layer_size
    key, kw, kb = jax.random.split(key, 3)
    w_out = 0.1 * jax.random.normal(kw, (in_dim, action_dim), jnp.float32)
    b_out = 0.1 * jax.random.normal(kb, (1, action_dim), jnp.float32)
    params["out"] = (w_out, b_out)
    return params


@functools.partial(jax.jit, static_argnames=("scale_factor",))
def inverse_dynamics_objective(state_features, target_actions, params,
                               scale_factor):
    B, T, F = state_features.shape
    A = target_actions.shape[-1]
    total_rows = B * T

    # Free (contiguous) flattening -- no data movement, no slicing, no pad.
    x_flat = state_features.reshape(total_rows, F)
    tgt_flat = target_actions.reshape(total_rows, A)

    # Batch-tile selection: biggest whole-batch tile under a conservative VMEM
    # budget (activation tiles are double-buffered; lane dim pads to 128).
    lane = 128
    bytes_per_row = 4 * (_round_up(F, lane) + _round_up(A, lane))
    act_budget = 12 * 1024 * 1024
    max_rows = max(T, act_budget // (2 * bytes_per_row))
    if total_rows <= max_rows:
        tile_b = B                                   # one tile covers it all
    else:
        step_b = 8 // math.gcd(T, 8)                 # keep tile rows % 8 == 0
        tile_b = max(step_b, ((max_rows // T) // step_b) * step_b)
    rows_per_tile = tile_b * T
    num_tiles = (B + tile_b - 1) // tile_b

    # Parameters: tiny, cast/split in the wrapper; they stay VMEM-resident.
    hidden = params["hidden"]
    w0, b0 = hidden[0]
    w0 = w0.astype(jnp.bfloat16)
    w0_top, w0_bot = w0[:F], w0[F:]

    flat_inputs = [x_flat, tgt_flat, w0_top, w0_bot, b0.astype(jnp.float32)]
    in_specs = [
        pl.BlockSpec((rows_per_tile, F), lambda i: (i, 0)),
        pl.BlockSpec((rows_per_tile, A), lambda i: (i, 0)),
        pl.BlockSpec(w0_top.shape, lambda i: (0, 0)),
        pl.BlockSpec(w0_bot.shape, lambda i: (0, 0)),
        pl.BlockSpec(b0.shape, lambda i: (0, 0)),
    ]
    for w, b in hidden[1:]:
        flat_inputs += [w.astype(jnp.bfloat16), b.astype(jnp.float32)]
        in_specs += [pl.BlockSpec(w.shape, lambda i: (0, 0)),
                     pl.BlockSpec(b.shape, lambda i: (0, 0))]
    w_out, b_out = params["out"]
    flat_inputs += [w_out.astype(jnp.bfloat16), b_out.astype(jnp.float32)]
    in_specs += [pl.BlockSpec(w_out.shape, lambda i: (0, 0)),
                 pl.BlockSpec(b_out.shape, lambda i: (0, 0))]

    kernel = make_inv_dyn_kernel(len(hidden), T, rows_per_tile, total_rows)

    partials = pl.pallas_call(
        kernel,
        out_shape=jax.ShapeDtypeStruct((1, num_tiles), jnp.float32),
        grid=(num_tiles,),
        in_specs=in_specs,
        out_specs=pl.BlockSpec(memory_space=pltpu.MemorySpace.SMEM),
        compiler_params=pltpu.CompilerParams(
            dimension_semantics=("arbitrary",),
            vmem_limit_bytes=32 * 1024 * 1024),
    )(*flat_inputs)

    mse = jnp.sum(partials) * jnp.float32(1.0 / (B * (T - 1) * A))
    loss = jnp.float32(scale_factor) * mse
    return loss, {"mse": mse}


def reference(state_features, target_actions, params, scale_factor,
              cast_bf16=False):
    """Pure-JAX reference of the PyTorch forward (for sanity checking)."""
    state = state_features[:, :-1]
    next_state = state_features[:, 1:]
    h = jnp.concatenate([state, next_state], axis=-1)
    if cast_bf16:
        h = h.astype(jnp.bfloat16)
    for w, b in params["hidden"]:
        if cast_bf16:
            w = w.astype(jnp.bfloat16)
        h = jnp.maximum(
            jnp.dot(h, w, preferred_element_type=jnp.float32) + b, 0.0)
        if cast_bf16:
            h = h.astype(jnp.bfloat16)
    w_out, b_out = params["out"]
    if cast_bf16:
        w_out = w_out.astype(jnp.bfloat16)
    pred = jnp.dot(h, w_out, preferred_element_type=jnp.float32) + b_out
    mse = jnp.mean((pred - target_actions[:, 1:]) ** 2)
    return scale_factor * mse, mse


if __name__ == "__main__":
    feature_dim = 16
    action_dim = 4
    scale_factor = 0.5
    num_layers = 2
    layer_size = 32
    B, T = 2, 8

    key = jax.random.PRNGKey(0)
    k_feat, k_act, k_params = jax.random.split(key, 3)
    state_features = jax.random.normal(k_feat, (B, T, feature_dim), jnp.float32)
    target_actions = jax.random.normal(k_act, (B, T, action_dim), jnp.float32)
    params = init_params(k_params, feature_dim, action_dim, num_layers,
                         layer_size)

    loss, aux = inverse_dynamics_objective(state_features, target_actions,
                                           params, scale_factor)
    loss = jax.block_until_ready(loss)

    # Precision-matched (bf16 operands, f32 accumulate) reference: tight check.
    ref_loss_bf16, ref_mse_bf16 = reference(state_features, target_actions,
                                            params, scale_factor,
                                            cast_bf16=True)
    assert jnp.allclose(loss, ref_loss_bf16, rtol=1e-3, atol=1e-5), (
        loss, ref_loss_bf16)
    assert jnp.allclose(aux["mse"], ref_mse_bf16, rtol=1e-3, atol=1e-5)

    # Full-f32 reference: loose check (bf16 matmul operands).
    ref_loss, ref_mse = reference(state_features, target_actions, params,
                                  scale_factor)
    assert jnp.allclose(loss, ref_loss, rtol=2e-2, atol=2e-3), (loss, ref_loss)
    assert jnp.allclose(aux["mse"], ref_mse, rtol=2e-2, atol=2e-3)

    print("KERNEL_OK")
</pallas_src>

<mosaic_0001>
module attributes {stable_mosaic.version = 11 : i64} {
  func.func @kernel(%arg0: i32, %arg1: memref<16x16xf32, #tpu.memory_space<vmem>>, %arg2: memref<16x4xf32, #tpu.memory_space<vmem>>, %arg3: memref<16x32xbf16, #tpu.memory_space<vmem>>, %arg4: memref<16x32xbf16, #tpu.memory_space<vmem>>, %arg5: memref<1x32xf32, #tpu.memory_space<vmem>>, %arg6: memref<32x32xbf16, #tpu.memory_space<vmem>>, %arg7: memref<1x32xf32, #tpu.memory_space<vmem>>, %arg8: memref<32x4xbf16, #tpu.memory_space<vmem>>, %arg9: memref<1x4xf32, #tpu.memory_space<vmem>>, %arg10: memref<1x1xf32, #tpu.memory_space<smem>>) attributes {dimension_semantics = [#tpu.dimension_semantics<arbitrary>], iteration_bounds = array<i64: 1>, scalar_prefetch = 0 : i64, scratch_operands = 0 : i64, tpu.core_type = #tpu.core_type<tc>, window_params = [{transform_indices = @transform_0, window_bounds = array<i64: 16, 16>}, {transform_indices = @transform_1, window_bounds = array<i64: 16, 4>}, {pipeline_mode = #tpu.pipeline_mode<synchronous>, transform_indices = @transform_2, window_bounds = array<i64: 16, 32>}, {pipeline_mode = #tpu.pipeline_mode<synchronous>, transform_indices = @transform_3, window_bounds = array<i64: 16, 32>}, {pipeline_mode = #tpu.pipeline_mode<synchronous>, transform_indices = @transform_4, window_bounds = array<i64: 1, 32>}, {pipeline_mode = #tpu.pipeline_mode<synchronous>, transform_indices = @transform_5, window_bounds = array<i64: 32, 32>}, {pipeline_mode = #tpu.pipeline_mode<synchronous>, transform_indices = @transform_6, window_bounds = array<i64: 1, 32>}, {pipeline_mode = #tpu.pipeline_mode<synchronous>, transform_indices = @transform_7, window_bounds = array<i64: 32, 4>}, {pipeline_mode = #tpu.pipeline_mode<synchronous>, transform_indices = @transform_8, window_bounds = array<i64: 1, 4>}, {transform_indices = @transform_9, window_bounds = array<i64: 1, 1>}]} {
    %c0 = arith.constant 0 : index
    %c0_0 = arith.constant 0 : index
    %0 = vector.load %arg1[%c0, %c0_0] : memref<16x16xf32, #tpu.memory_space<vmem>>, vector<15x16xf32>
    %1 = arith.truncf %0 : vector<15x16xf32> to vector<15x16xbf16>
    %c1 = arith.constant 1 : index
    %c0_1 = arith.constant 0 : index
    %2 = vector.load %arg1[%c1, %c0_1] : memref<16x16xf32, #tpu.memory_space<vmem>>, vector<15x16xf32>
    %3 = arith.truncf %2 : vector<15x16xf32> to vector<15x16xbf16>
    %c0_2 = arith.constant 0 : index
    %c0_3 = arith.constant 0 : index
    %4 = vector.load %arg3[%c0_2, %c0_3] : memref<16x32xbf16, #tpu.memory_space<vmem>>, vector<16x32xbf16>
    %cst = arith.constant dense<0.000000e+00> : vector<15x32xf32>
    %5 = tpu.matmul %1, %4, %cst {dimension_numbers = #tpu.dot_dimension_numbers<[1], [0], [0], [1], [0, 0, 1, 1], [], []>} : vector<15x16xbf16>, vector<16x32xbf16>, vector<15x32xf32> -> vector<15x32xf32>
    %c0_4 = arith.constant 0 : index
    %c0_5 = arith.constant 0 : index
    %6 = vector.load %arg4[%c0_4, %c0_5] : memref<16x32xbf16, #tpu.memory_space<vmem>>, vector<16x32xbf16>
    %cst_6 = arith.constant dense<0.000000e+00> : vector<15x32xf32>
    %7 = tpu.matmul %3, %6, %cst_6 {dimension_numbers = #tpu.dot_dimension_numbers<[1], [0], [0], [1], [0, 0, 1, 1], [], []>} : vector<15x16xbf16>, vector<16x32xbf16>, vector<15x32xf32> -> vector<15x32xf32>
    %8 = arith.addf %5, %7 : vector<15x32xf32>
    %c0_7 = arith.constant 0 : index
    %c0_8 = arith.constant 0 : index
    %9 = vector.load %arg5[%c0_7, %c0_8] : memref<1x32xf32, #tpu.memory_space<vmem>>, vector<1x32xf32>
    %10 = vector.broadcast %9 : vector<1x32xf32> to vector<15x32xf32>
    %11 = arith.addf %8, %10 : vector<15x32xf32>
    %cst_9 = arith.constant 0.000000e+00 : f32
    %12 = vector.broadcast %cst_9 : f32 to vector<15x32xf32>
    %13 = arith.maximumf %11, %12 : vector<15x32xf32>
    %14 = arith.truncf %13 : vector<15x32xf32> to vector<15x32xbf16>
    %c0_10 = arith.constant 0 : index
    %c0_11 = arith.constant 0 : index
    %15 = vector.load %arg6[%c0_10, %c0_11] : memref<32x32xbf16, #tpu.memory_space<vmem>>, vector<32x32xbf16>
    %cst_12 = arith.constant dense<0.000000e+00> : vector<15x32xf32>
    %16 = tpu.matmul %14, %15, %cst_12 {dimension_numbers = #tpu.dot_dimension_numbers<[1], [0], [0], [1], [0, 0, 1, 1], [], []>} : vector<15x32xbf16>, vector<32x32xbf16>, vector<15x32xf32> -> vector<15x32xf32>
    %c0_13 = arith.constant 0 : index
    %c0_14 = arith.constant 0 : index
    %17 = vector.load %arg7[%c0_13, %c0_14] : memref<1x32xf32, #tpu.memory_space<vmem>>, vector<1x32xf32>
    %18 = vector.broadcast %17 : vector<1x32xf32> to vector<15x32xf32>
    %19 = arith.addf %16, %18 : vector<15x32xf32>
    %cst_15 = arith.constant 0.000000e+00 : f32
    %20 = vector.broadcast %cst_15 : f32 to vector<15x32xf32>
    %21 = arith.maximumf %19, %20 : vector<15x32xf32>
    %22 = arith.truncf %21 : vector<15x32xf32> to vector<15x32xbf16>
    %c0_16 = arith.constant 0 : index
    %c0_17 = arith.constant 0 : index
    %23 = vector.load %arg8[%c0_16, %c0_17] : memref<32x4xbf16, #tpu.memory_space<vmem>>, vector<32x4xbf16>
    %cst_18 = arith.constant dense<0.000000e+00> : vector<15x4xf32>
    %24 = tpu.matmul %22, %23, %cst_18 {dimension_numbers = #tpu.dot_dimension_numbers<[1], [0], [0], [1], [0, 0, 1, 1], [], []>} : vector<15x32xbf16>, vector<32x4xbf16>, vector<15x4xf32> -> vector<15x4xf32>
    %c0_19 = arith.constant 0 : index
    %c0_20 = arith.constant 0 : index
    %25 = vector.load %arg9[%c0_19, %c0_20] : memref<1x4xf32, #tpu.memory_space<vmem>>, vector<1x4xf32>
    %26 = vector.broadcast %25 : vector<1x4xf32> to vector<15x4xf32>
    %27 = arith.addf %24, %26 : vector<15x4xf32>
    %c1_21 = arith.constant 1 : index
    %c0_22 = arith.constant 0 : index
    %28 = vector.load %arg2[%c1_21, %c0_22] : memref<16x4xf32, #tpu.memory_space<vmem>>, vector<15x4xf32>
    %29 = arith.subf %27, %28 : vector<15x4xf32>
    %30 = tpu.iota {dimensions = array<i32: 0>} : vector<15x4xi32>
    %c7_i32 = arith.constant 7 : i32
    %31 = vector.broadcast %c7_i32 : i32 to vector<15x4xi32>
    %32 = arith.andi %30, %31 : vector<15x4xi32>
    %c16_i32 = arith.constant 16 : i32
    %33 = arith.muli %arg0, %c16_i32 : i32
    %c15_i32 = arith.constant 15 : i32
    %34 = arith.subi %c15_i32, %33 : i32
    %c7_i32_23 = arith.constant 7 : i32
    %35 = vector.broadcast %c7_i32_23 : i32 to vector<15x4xi32>
    %36 = arith.cmpi ne, %32, %35 : vector<15x4xi32>
    %37 = vector.broadcast %34 : i32 to vector<15x4xi32>
    %38 = arith.cmpi slt, %30, %37 : vector<15x4xi32>
    %39 = arith.andi %36, %38 : vector<15x4xi1>
    %40 = arith.mulf %29, %29 : vector<15x4xf32>
    %cst_24 = arith.constant 0.000000e+00 : f32
    %41 = vector.broadcast %cst_24 : f32 to vector<15x4xf32>
    %42 = arith.select %39, %40, %41 : vector<15x4xi1>, vector<15x4xf32>
    %43 = vector.shape_cast %42 : vector<15x4xf32> to vector<1x15x4xf32>
    %cst_25 = arith.constant dense<0.000000e+00> : vector<1xf32>
    %44 = vector.multi_reduction <add>, %43, %cst_25 [1, 2] : vector<1x15x4xf32> to vector<1xf32>
    %45 = vector.shape_cast %44 : vector<1xf32> to vector<1x1x1xf32>
    %46 = vector.extract %45[0, 0, 0] : f32 from vector<1x1x1xf32>
    %c0_26 = arith.constant 0 : index
    %47 = arith.index_cast %arg0 : i32 to index
    %48 = memref.load %arg10[%c0_26, %47] : memref<1x1xf32, #tpu.memory_space<smem>>
    memref.store %46, %arg10[%c0_26, %47] : memref<1x1xf32, #tpu.memory_space<smem>>
    return
  }
  func.func @transform_0(%arg0: i32) -> (i32, i32) {
    %c0_i32 = arith.constant 0 : i32
    %c0_i32_0 = arith.constant 0 : i32
    return %arg0, %c0_i32 : i32, i32
  }
  func.func @transform_1(%arg0: i32) -> (i32, i32) {
    %c0_i32 = arith.constant 0 : i32
    %c0_i32_0 = arith.constant 0 : i32
    return %arg0, %c0_i32 : i32, i32
  }
  func.func @transform_2(%arg0: i32) -> (i32, i32) {
    %c0_i32 = arith.constant 0 : i32
    %c0_i32_0 = arith.constant 0 : i32
    %c0_i32_1 = arith.constant 0 : i32
    return %c0_i32, %c0_i32_0 : i32, i32
  }
  func.func @transform_3(%arg0: i32) -> (i32, i32) {
    %c0_i32 = arith.constant 0 : i32
    %c0_i32_0 = arith.constant 0 : i32
    %c0_i32_1 = arith.constant 0 : i32
    return %c0_i32, %c0_i32_0 : i32, i32
  }
  func.func @transform_4(%arg0: i32) -> (i32, i32) {
    %c0_i32 = arith.constant 0 : i32
    %c0_i32_0 = arith.constant 0 : i32
    %c0_i32_1 = arith.constant 0 : i32
    return %c0_i32, %c0_i32_0 : i32, i32
  }
  func.func @transform_5(%arg0: i32) -> (i32, i32) {
    %c0_i32 = arith.constant 0 : i32
    %c0_i32_0 = arith.constant 0 : i32
    %c0_i32_1 = arith.constant 0 : i32
    return %c0_i32, %c0_i32_0 : i32, i32
  }
  func.func @transform_6(%arg0: i32) -> (i32, i32) {
    %c0_i32 = arith.constant 0 : i32
    %c0_i32_0 = arith.constant 0 : i32
    %c0_i32_1 = arith.constant 0 : i32
    return %c0_i32, %c0_i32_0 : i32, i32
  }
  func.func @transform_7(%arg0: i32) -> (i32, i32) {
    %c0_i32 = arith.constant 0 : i32
    %c0_i32_0 = arith.constant 0 : i32
    %c0_i32_1 = arith.constant 0 : i32
    return %c0_i32, %c0_i32_0 : i32, i32
  }
  func.func @transform_8(%arg0: i32) -> (i32, i32) {
    %c0_i32 = arith.constant 0 : i32
    %c0_i32_0 = arith.constant 0 : i32
    %c0_i32_1 = arith.constant 0 : i32
    return %c0_i32, %c0_i32_0 : i32, i32
  }
  func.func @transform_9(%arg0: i32) -> (i32, i32) {
    %c0_i32 = arith.constant 0 : i32
    %c0_i32_0 = arith.constant 0 : i32
    %c0_i32_1 = arith.constant 0 : i32
    return %c0_i32, %c0_i32_0 : i32, i32
  }
}

</mosaic_0001>

<bundles_post_ra>
// kernel: inverse_dynamics_objective.1
= control target key start
LH: loop header
LB: loop body
LE: loop exit
PB: predicated region body
PF: predicated region fallthrough
CT: control target
= control target key end

     0   :  { %v420_v1 = vmov 0.0   ;;  %vm421_vm0 = vmmov 0   ;;  %vm50_vm1 = vcmask 130048   ;;  %s536_s0 = inlined_call_operand.vmem [shape: f32[16,16], index: 0, kind: input, shape index: {}]   ;;  %s537_s1 = inlined_call_operand.vmem [shape: f32[16,4], index: 1, kind: input, shape index: {}]   ;;  %s538_s2 = inlined_call_operand.vmem [shape: bf16[16,32], index: 2, kind: input, shape index: {}]   ;;  %s539_s3 = inlined_call_operand.vmem [shape: bf16[16,32], index: 3, kind: input, shape index: {}]   ;;  %s540_s4 = inlined_call_operand.vmem [shape: f32[1,32], index: 4, kind: input, shape index: {}]   ;;  %s541_s5 = inlined_call_operand.vmem [shape: bf16[32,32], index: 5, kind: input, shape index: {}]   ;;  %s542_s6 = inlined_call_operand.vmem [shape: f32[1,32], index: 6, kind: input, shape index: {}]   ;;  %s543_s7 = inlined_call_operand.vmem [shape: bf16[32,4], index: 7, kind: input, shape index: {}]   ;;  %s544_s8 = inlined_call_operand.vmem [shape: f32[1,4], index: 8, kind: input, shape index: {}]   ;;  %s545_s9 = inlined_call_operand.hbm [shape: f32[1,1], index: 9, kind: output, shape index: {}]  }
   0x1   :  { %v402_v0 = vld [vmem:[%s539_s3] sm:$0xff]   ;;  %369 = vmatprep.subr.bf16.mxu0 %v420_v1  ;;  %375 = vmatprep.subr.bf16.mxu1 %v420_v1  ;;  %v38_v4 = vld [vmem:[%s536_s0 + $0x9] sm:$0x7f] }
   0x2   :  { %v403_v2 = vld [vmem:[%s538_s2] sm:$0xff]   ;;  %370 = vmatpush3.bf16.msra.mxu0 %v402_v0  ;;  %371 = vmatprep.mubr.msk.bf16.mxu0 %vm421_vm0, %v420_v1  ;;  %v35_v7 = vld [vmem:[%s536_s0 + $0x8] sm:$0x7f] }
   0x3   :  { %v37_v3 = vld [vmem:[%s536_s0 + $0x1] sm:$0xff]  ;;  %376 = vmatpush3.bf16.msra.mxu1 %v403_v2  ;;  %377 = vmatprep.mubr.msk.bf16.mxu1 %vm421_vm0, %v420_v1 }
   0x4   :  { %v34_v5 = vld [vmem:[%s536_s0] sm:$0xff]  ;;  %v39_v6 = vpack.c.bf16 %v38_v4, %v37_v3  ;;  %381 = vmatprep.subr.bf16.mxu0 %v420_v1  ;;  %389 = vmatprep.subr.bf16.mxu1 %v420_v1 }
   0x5   :  { %v36_v8 = vpack.c.bf16 %v35_v7, %v34_v5 }
   0x6   :  { %372 = vmatmul.mubr.msk.bf16.vlgmr.msra.gmra.mrb[0].mxu0 %vm50_vm1, %v39_v6 }
   0x7   :  { %378 = vmatmul.mubr.msk.bf16.vlgmr.msra.gmra.mrb[0].mxu1 %vm50_vm1, %v36_v8  ;;  %385 = vmatprep.mubr.msk.bf16.mxu0 %vm421_vm0, %v420_v1 }
   0x8   :  { %14 = vsyncpa [#allocation3], 0  ;;  %393 = vmatprep.mubr.msk.bf16.mxu1 %vm421_vm0, %v420_v1  ;;  %v404_v9 = vld [vmem:[%s541_s5] sm:$0xff]   ;;  %v405_v10 = vld [vmem:[%s541_s5 + $0x8] sm:$0xff]   ;;  %vm180_vm2 = vcmask 261120   ;;  %v299_v39 = vlaneseq  ;;  %vm317_vm7 = vcmask 31744  }
   0x9   :  { %382 = vmatpush3.bf16.msra.mxu0 %v404_v9  ;;  %v350_v13 = vld [vmem:[%s540_s4] ss:$0 sm:$0xff]  ;;  %v407_v28 = vld [vmem:[%s543_s7 + $0x8] sm:$0xff]   ;;  %vm319_vm8 = vcmask 30720   ;;  %s408_s12 = scalar_lea.hbm %s545_s9, 16 }
   0xa   :  { %383 = vmatprep.subr.bf16.mxu0 %v420_v1  ;;  %v406_v27 = vld [vmem:[%s543_s7] sm:$0xff]   ;;  %v300_v40 = vshrl.u32 %v299_v39, 7  ;;  %v296_v50 = vld [vmem:[%s537_s1 + $0x9] sm:$0x7f]  ;;  %p409_p0 = scmp.ne.s32.totalorder %s545_s9, %s408_s12  ;;  %p412_p1 = scmp.lt.u32.totalorder %s408_s12, %s545_s9 }
   0xb   :  { %390 = vmatpush3.bf16.msra.mxu1 %v406_v27  ;;  %v351_v29 = vld [vmem:[%s542_s6] ss:$0 sm:$0xff]  ;;  %v295_v45 = vld [vmem:[%s537_s1 + $0x1] sm:$0xff] }
   0xc   :  { %391 = vmatprep.subr.bf16.mxu1 %v420_v1  ;;  %v301_v41 = vadd.s32 8, %v300_v40  ;;  %v355_v42 = vld [vmem:[%s544_s8] ss:$0 sm:$0xff]  ;;  %v302_v46 = vand.u32 7, %v300_v40  ;;  %p414_p2 = pnand %p412_p1, %p409_p0 }
   0xd   :  { %384 = vmatpush3.bf16.msra.mxu0 %v405_v10 }
   0xe   :  { %v303_v43 = vand.u32 7, %v301_v41  ;;  %vm310_vm4 = vcmp.lt.s32.totalorder %v301_v41, 15  ;;  %vm306_vm5 = vcmp.ne.s32.totalorder %v302_v46, 7 }
   0xf   :  { %392 = vmatpush3.bf16.msra.mxu1 %v407_v28 }
  0x10   :  { %vm307_vm3 = vcmp.ne.s32.totalorder %v303_v43, 7 }
  0x11   :  { %vm312_vm6 = vmand %vm307_vm3, %vm310_vm4 }
  0xd9   :  { %v88_v11 = vpop.f32.mrb[0].mxu0 }
  0xda   :  { %v138_v12 = vpop.f32.mrb[0].mxu1  ;;  %v373_v14 = vpop.f32.mrb[1].mxu0 }
  0xdb   :  { %v139_v15 = vadd.f32 %v138_v12, %v88_v11  ;;  %v379_v16 = vpop.f32.mrb[1].mxu1  ;;  %v91_v17 = vpop.f32.mrb[2].mxu0 }
  0xdc   :  { %v141_v18 = vpop.f32.mrb[2].mxu1  ;;  %v374_v19 = vpop.f32.mrb[3].mxu0 }
  0xdd   :  { %v152_v20 = vadd.f32 %v350_v13, %v139_v15  ;;  %v142_v21 = vadd.f32 %v141_v18, %v91_v17  ;;  %v380_v22 = vpop.f32.mrb[3].mxu1 }
  0xdf   :  { %v153_v23 = vadd.f32 %v350_v13, %v142_v21  ;;  %v154_v24 = vmax.f32 %v152_v20, 0.0 }
  0xe1   :  { %v155_v25 = vmax.f32 %v153_v23, 0.0 }
  0xe3   :  { %v156_v26 = vpack.c.bf16 %v155_v25, %v154_v24 }
  0xe5   :  { %386 = vmatmul.mubr.msk.bf16.vlgmr.msra.gmra.mrb[4].mxu0 %vm180_vm2, %v156_v26 }
 0x1b8   :  { %v218_v30 = vpop.f32.mrb[4].mxu0 }
 0x1b9   :  { %v219_v31 = vadd.f32 %v351_v29, %v218_v30  ;;  %v387_v32 = vpop.f32.mrb[5].mxu0 }
 0x1ba   :  { %v221_v33 = vpop.f32.mrb[6].mxu0 }
 0x1bb   :  { %v222_v34 = vadd.f32 %v351_v29, %v221_v33  ;;  %v388_v35 = vpop.f32.mrb[7].mxu0  ;;  %v225_v36 = vmax.f32 %v219_v31, 0.0 }
 0x1bd   :  { %v226_v37 = vmax.f32 %v222_v34, 0.0 }
 0x1bf   :  { %v227_v38 = vpack.c.bf16 %v226_v37, %v225_v36 }
 0x1c1   :  { %394 = vmatmul.mubr.msk.bf16.vlgmr.msra.gmra.mrb[4].mxu1 %vm180_vm2, %v227_v38 }
 0x294   :  { %v288_v44 = vpop.f32.mrb[4].mxu1 }
 0x295   :  { %v289_v47 = vadd.f32 %v355_v42, %v288_v44  ;;  %v395_v48 = vpop.f32.mrb[5].mxu1 }
 0x296   :  { %v291_v49 = vpop.f32.mrb[6].mxu1 }
 0x297   :  { %v297_v51 = vsub.f32 %v289_v47, %v295_v45  ;;  %v292_v52 = vadd.f32 %v355_v42, %v291_v49  ;;  %v396_v53 = vpop.f32.mrb[7].mxu1 }
 0x299   :  { %v313_v54 = vmul.f32 %v297_v51, %v297_v51  ;;  %v298_v55 = vsub.f32 %v292_v52, %v296_v50 }
 0x29b   :  { %v314_v56 = vmul.f32 %v298_v55, %v298_v55  ;;  %v315_v57 = vsel %vm306_vm5, %v313_v54, 0.0 }
 0x29c   :  { %v318_v59 = vsel %vm317_vm7, %v315_v57, 0.0 }
 0x29d   :  { %v316_v58 = vsel %vm312_vm6, %v314_v56, 0.0 }
 0x29e   :  { %v320_v60 = vsel %vm319_vm8, %v316_v58, 0.0 }
 0x29f   :  { %v321_v61 = vadd.f32 %v320_v60, %v318_v59 }
 0x2a1   :  { %322 = vadd.xlane.f32.xlu0 %v321_v61 }
 0x32e   :  { %v323_v62 = vpop.xlane.xlu0 %322 }
 0x32f   :  { %v324_v63 = vrot.slane %v323_v62, 4 }
 0x331   :  { %v325_v0 = vadd.f32 %v324_v63, %v323_v62 }
 0x333   :  { %v326_v1 = vrot.slane %v325_v0, 2 }
 0x335   :  { %v327_v2 = vadd.f32 %v326_v1, %v325_v0 }
 0x337   :  { %v328_v3 = vrot.slane %v327_v2, 1 }
 0x339   :  { %v329_v4 = vadd.f32 %v328_v3, %v327_v2 }
 0x33b   :  { %397 = vpush %v329_v4 }
 0x36c   :  { %s398_s1 = spop %397 }
 0x36d   :  { %332 = sst [smem:[#allocation2]] %s398_s1 }
 0x36e   :  { %417 = shalt.err (!%p414_p2)
}
 0x36f   :  { %s422_s3 = smov [#allocation2]  }
 0x370   :  { %340 = dma.smem_to_hbm %s422_s3, 16, %s545_s9, [#allocation3]  }
 0x371   :  { %418 = dma.done.wait [#allocation3], 16  }
 0x372   :  { %419 = vsyncadd [#allocation3], 4294967280 }
 0x373   :  { %344 = sfence }
 0x374   :  { %345 = vsyncpa [#allocation3], 1 }

</bundles_post_ra>
